<compile_context>
chip_gen: v6e
topology: v6e:2x2x1
jax: 0.10.0
libtpu: 0.0.40
codegen_flags: <defaults>
</compile_context>

<pallas_src>
import functools
import math

import jax
import jax.numpy as jnp
from jax import lax
from jax.experimental import pallas as pl
from jax.experimental.pallas import tpu as pltpu

_INV_SQRT2 = 1.0 / math.sqrt(2.0)


def _round_up(a, m):
    return ((a + m - 1) // m) * m


def _lane_roll(x, shift):
    """jnp.roll semantics along the last (lane) axis with a static shift."""
    f = x.shape[-1]
    return pltpu.roll(x, shift % f, axis=x.ndim - 1)


def _pm_kernel(*refs, H, W, Fp, kappa, option, inline_masks):
    """refs = (x_ref, o_ref) or (x_ref, bits_ref, o_ref).

    x_ref: (TB, Fp) f32 -- each row is one image, row-major, lane-padded.
    """
    if inline_masks:
        # W is a power of two: build the reflect-boundary masks from a lane
        # iota, no extra inputs / DMAs and no integer div/mod.
        x_ref, o_ref = refs
        lane = lax.broadcasted_iota(jnp.int32, (1, Fp), 1)
        col = lane & (W - 1)
        row0 = lane < W                      # i == 0
        rowL = lane >= (H - 1) * W           # i == H-1  (padded lanes: don't care)
        col0 = col == 0                      # j == 0
        colL = col == (W - 1)                # j == W-1
    else:
        x_ref, bits_ref, o_ref = refs
        bits = bits_ref[...]                 # (1, Fp) int32 packed masks
        row0 = (bits & 1) > 0
        rowL = (bits & 2) > 0
        col0 = (bits & 4) > 0
        colL = (bits & 8) > 0

    x = x_ref[...]

    # Neighbor taps via lane rotations; reflect boundary via select.
    #   x_up[i,j]    = x[i-1,j]  (i>0)      else x[1,j]
    #   x_right[i,j] = x[i,j+1]  (j<W-1)    else x[i,W-2]
    x_up = jnp.where(row0, _lane_roll(x, -W), _lane_roll(x, W))
    x_right = jnp.where(colL, _lane_roll(x, 1), _lane_roll(x, -1))

    # dx = sqrt(2)*fx, dy = sqrt(2)*fy  (the 1/sqrt(2) factors are folded).
    dx = x_right - x
    dy = x_up - x

    q = (dx * dx + dy * dy) * jnp.float32(0.5 / (kappa * kappa))
    if option == 1:
        d = 1.0 + q
        r = pl.reciprocal(d, approx=True)    # EUP slot (otherwise idle)
        cI = r * (2.0 - d * r)               # one Newton step -> ~f32 accuracy
    else:
        cI = jnp.exp(-q)                     # EUP

    gdx = dx * cI
    gdy = dy * cI

    #   gdx_left[i,j] = gdx[i,j-1]  (j>0)     else gdx[i,1]
    #   gdy_down[i,j] = gdy[i+1,j]  (i<H-1)   else gdy[H-2,j]
    gdx_left = jnp.where(col0, _lane_roll(gdx, -1), _lane_roll(gdx, 1))
    gdy_down = jnp.where(rowL, _lane_roll(gdy, W), _lane_roll(gdy, -W))

    # term = grad_x2(fx*cI) + grad_y2(fy*cI), with both 1/sqrt(2) folded to 0.5.
    o_ref[...] = ((gdx - gdx_left) + (gdy - gdy_down)) * jnp.float32(0.5)


def _mask_bits(H, W, Fp):
    """(1, Fp) int32 packed reflect-boundary masks (general-W fallback)."""
    F = H * W
    lane = jnp.arange(Fp, dtype=jnp.int32)
    valid = lane < F
    row = jnp.where(valid, lane // W, 0)
    col = jnp.where(valid, lane % W, 0)
    bits = ((row == 0).astype(jnp.int32)
            + (row == H - 1).astype(jnp.int32) * 2
            + (col == 0).astype(jnp.int32) * 4
            + (col == W - 1).astype(jnp.int32) * 8)
    return bits.reshape(1, Fp)


def _device_kind():
    try:
        return jax.devices()[0].device_kind.lower()
    except Exception:
        return ""


def _choose_blocking(B, Fp):
    """Row-block (images per grid step), grid size, padded batch, vmem limit."""
    kind = _device_kind()
    is_v7 = ("v7" in kind) or ("7x" in kind)

    # v7x: 2 TCs but only 64 MiB VMEM/TC -> small blocks + >=2 grid steps.
    # v5e/v6e: 1 TC, 128 MiB VMEM -> big streaming tiles, grid steps are pure
    # overhead for this HBM-bound kernel.
    cap_bytes = (4 << 20) if is_v7 else (16 << 20)

    row_bytes = Fp * 4
    rows_cap = max(8, (cap_bytes // row_bytes) // 8 * 8)
    bp8 = _round_up(B, 8)

    tb = min(rows_cap, bp8)
    num_blocks = -(-B // tb)

    if is_v7 and num_blocks == 1 and bp8 >= 16:
        # Guarantee >=2 grid steps so dimension_semantics=('parallel',) can
        # shard across both v7x TensorCores.
        tb = _round_up(-(-B // 2), 8)
        num_blocks = -(-B // tb)

    bp = num_blocks * tb

    # Double-buffered in + out blocks (+ headroom), clamped below physical VMEM.
    block_bytes = tb * row_bytes
    limit_hi = (56 << 20) if is_v7 else (100 << 20)
    vmem_limit = int(min(limit_hi, max(32 << 20, 6 * block_bytes)))
    return tb, num_blocks, bp, vmem_limit


def perona_malik(x_nchw, kappa, option=2):
    """x_nchw: (N, 1, H, W) float32. Returns (N, 1, H, W) float32."""
    N, C, H, W = x_nchw.shape
    assert H >= 2 and W >= 2, "reflect padding requires H >= 2 and W >= 2"
    B = N * C
    F = H * W
    Fp = _round_up(F, 128)   # lane-dense, unmasked vst; (8,128) rule safe

    # Flatten each image into the lane dimension; pad lanes with zeros (inert:
    # every real lane's taps land on real lanes, boundary wrap is overwritten
    # by the reflect selects, and padded output lanes are sliced off).
    x = x_nchw.reshape(B, F).astype(jnp.float32)
    if Fp != F:
        x = jnp.pad(x, ((0, 0), (0, Fp - F)))

    TB, num_blocks, Bp, vmem_limit = _choose_blocking(B, Fp)
    if Bp != B:
        x = jnp.pad(x, ((0, Bp - B), (0, 0)))

    pow2_w = (W & (W - 1)) == 0
    inputs = [x]
    in_specs = [pl.BlockSpec((TB, Fp), lambda n: (n, 0))]
    if not pow2_w:
        inputs.append(_mask_bits(H, W, Fp))
        in_specs.append(pl.BlockSpec((1, Fp), lambda n: (0, 0)))

    kernel = functools.partial(
        _pm_kernel, H=H, W=W, Fp=Fp,
        kappa=float(kappa), option=int(option), inline_masks=pow2_w)

    out = pl.pallas_call(
        kernel,
        out_shape=jax.ShapeDtypeStruct((Bp, Fp), jnp.float32),
        grid_spec=pltpu.PrefetchScalarGridSpec(
            num_scalar_prefetch=0,
            grid=(num_blocks,),
            in_specs=in_specs,
            out_specs=pl.BlockSpec((TB, Fp), lambda n: (n, 0)),
        ),
        compiler_params=pltpu.CompilerParams(
            dimension_semantics=("parallel",),
            vmem_limit_bytes=vmem_limit),
    )(*inputs)
    return out[:B, :F].reshape(N, C, H, W)


def _reference(x, kappa, option=2):
    # Pure-JAX reference matching PyTorch conv2d(reflect) semantics exactly.
    s = _INV_SQRT2
    xp = jnp.pad(x, ((0, 0), (0, 0), (1, 1), (1, 1)), mode="reflect")
    fy = (xp[:, :, 0:-2, 1:-1] - x) * s
    fx = (xp[:, :, 1:-1, 2:] - x) * s
    gradf2 = fy ** 2 + fx ** 2
    if option == 1:
        cI = 1.0 / (1.0 + gradf2 / kappa ** 2)
    else:
        cI = jnp.exp(-gradf2 / kappa ** 2)
    gfx = fx * cI
    gfy = fy * cI
    gfxp = jnp.pad(gfx, ((0, 0), (0, 0), (1, 1), (1, 1)), mode="reflect")
    gfyp = jnp.pad(gfy, ((0, 0), (0, 0), (1, 1), (1, 1)), mode="reflect")
    term = (gfx - gfxp[:, :, 1:-1, 0:-2]) * s + (gfy - gfyp[:, :, 2:, 1:-1]) * s
    return term


if __name__ == "__main__":
    key = jax.random.PRNGKey(0)
    kappa = 50.0

    # Main case: power-of-two W (in-kernel iota masks), option 2 and option 1.
    x = jax.random.normal(key, (2, 1, 16, 16), dtype=jnp.float32)

    out2 = jax.block_until_ready(perona_malik(x, kappa=kappa, option=2))
    ref2 = _reference(x, kappa, option=2)
    err2 = float(jnp.max(jnp.abs(out2 - ref2)))
    assert err2 < 1e-4, f"option 2 max abs error {err2}"

    out1 = jax.block_until_ready(perona_malik(x, kappa=kappa, option=1))
    ref1 = _reference(x, kappa, option=1)
    err1 = float(jnp.max(jnp.abs(out1 - ref1)))
    assert err1 < 1e-4, f"option 1 max abs error {err1}"

    # General-shape case: non-power-of-two W, H*W not a multiple of 128,
    # batch not a multiple of 8 (exercises lane/row padding + mask-bit input).
    key2 = jax.random.PRNGKey(1)
    xg = jax.random.normal(key2, (3, 1, 12, 12), dtype=jnp.float32)
    outg = jax.block_until_ready(perona_malik(xg, kappa=kappa, option=2))
    refg = _reference(xg, kappa, option=2)
    errg = float(jnp.max(jnp.abs(outg - refg)))
    assert errg < 1e-4, f"general-shape max abs error {errg}"

    print("KERNEL_OK")
</pallas_src>

<mosaic_0001>
module attributes {stable_mosaic.version = 11 : i64} {
  func.func @_pm_kernel(%arg0: i32, %arg1: memref<8x256xf32, #tpu.memory_space<vmem>>, %arg2: memref<8x256xf32, #tpu.memory_space<vmem>>) attributes {dimension_semantics = [#tpu.dimension_semantics<parallel>], iteration_bounds = array<i64: 1>, scalar_prefetch = 0 : i64, scratch_operands = 0 : i64, tpu.core_type = #tpu.core_type<tc>, window_params = [{transform_indices = @transform_0, window_bounds = array<i64: 8, 256>}, {transform_indices = @transform_1, window_bounds = array<i64: 8, 256>}]} {
    %0 = tpu.iota {dimensions = array<i32: 1>} : vector<1x256xi32>
    %c15_i32 = arith.constant 15 : i32
    %1 = vector.broadcast %c15_i32 : i32 to vector<1x256xi32>
    %2 = arith.andi %0, %1 : vector<1x256xi32>
    %c16_i32 = arith.constant 16 : i32
    %3 = vector.broadcast %c16_i32 : i32 to vector<1x256xi32>
    %4 = arith.cmpi slt, %0, %3 : vector<1x256xi32>
    %c240_i32 = arith.constant 240 : i32
    %5 = vector.broadcast %c240_i32 : i32 to vector<1x256xi32>
    %6 = arith.cmpi sge, %0, %5 : vector<1x256xi32>
    %c0_i32 = arith.constant 0 : i32
    %7 = vector.broadcast %c0_i32 : i32 to vector<1x256xi32>
    %8 = arith.cmpi eq, %2, %7 : vector<1x256xi32>
    %c15_i32_0 = arith.constant 15 : i32
    %9 = vector.broadcast %c15_i32_0 : i32 to vector<1x256xi32>
    %10 = arith.cmpi eq, %2, %9 : vector<1x256xi32>
    %c0 = arith.constant 0 : index
    %c0_1 = arith.constant 0 : index
    %11 = vector.load %arg1[%c0, %c0_1] : memref<8x256xf32, #tpu.memory_space<vmem>>, vector<8x256xf32>
    %c240_i32_2 = arith.constant 240 : i32
    %12 = tpu.dynamic_rotate %11 by %c240_i32_2 dim 1 : vector<8x256xf32>, i32 -> vector<8x256xf32>
    %c16_i32_3 = arith.constant 16 : i32
    %13 = tpu.dynamic_rotate %11 by %c16_i32_3 dim 1 : vector<8x256xf32>, i32 -> vector<8x256xf32>
    %14 = vector.shape_cast %4 : vector<1x256xi1> to vector<1x256xi1>
    %15 = vector.broadcast %14 : vector<1x256xi1> to vector<8x256xi1>
    %16 = arith.select %15, %12, %13 : vector<8x256xi1>, vector<8x256xf32>
    %c1_i32 = arith.constant 1 : i32
    %17 = tpu.dynamic_rotate %11 by %c1_i32 dim 1 : vector<8x256xf32>, i32 -> vector<8x256xf32>
    %c255_i32 = arith.constant 255 : i32
    %18 = tpu.dynamic_rotate %11 by %c255_i32 dim 1 : vector<8x256xf32>, i32 -> vector<8x256xf32>
    %19 = vector.shape_cast %10 : vector<1x256xi1> to vector<1x256xi1>
    %20 = vector.broadcast %19 : vector<1x256xi1> to vector<8x256xi1>
    %21 = arith.select %20, %17, %18 : vector<8x256xi1>, vector<8x256xf32>
    %22 = arith.subf %21, %11 : vector<8x256xf32>
    %23 = arith.subf %16, %11 : vector<8x256xf32>
    %24 = arith.mulf %22, %22 : vector<8x256xf32>
    %25 = arith.mulf %23, %23 : vector<8x256xf32>
    %26 = arith.addf %24, %25 : vector<8x256xf32>
    %cst = arith.constant 2.000000e-04 : f32
    %27 = vector.broadcast %cst : f32 to vector<8x256xf32>
    %28 = arith.mulf %26, %27 : vector<8x256xf32>
    %cst_4 = arith.constant 0.000000e+00 : f32
    %29 = vector.broadcast %cst_4 : f32 to vector<8x256xf32>
    %30 = arith.subf %29, %28 : vector<8x256xf32>
    %31 = math.exp %30 : vector<8x256xf32>
    %32 = arith.mulf %22, %31 : vector<8x256xf32>
    %33 = arith.mulf %23, %31 : vector<8x256xf32>
    %c255_i32_5 = arith.constant 255 : i32
    %34 = tpu.dynamic_rotate %32 by %c255_i32_5 dim 1 : vector<8x256xf32>, i32 -> vector<8x256xf32>
    %c1_i32_6 = arith.constant 1 : i32
    %35 = tpu.dynamic_rotate %32 by %c1_i32_6 dim 1 : vector<8x256xf32>, i32 -> vector<8x256xf32>
    %36 = vector.shape_cast %8 : vector<1x256xi1> to vector<1x256xi1>
    %37 = vector.broadcast %36 : vector<1x256xi1> to vector<8x256xi1>
    %38 = arith.select %37, %34, %35 : vector<8x256xi1>, vector<8x256xf32>
    %c16_i32_7 = arith.constant 16 : i32
    %39 = tpu.dynamic_rotate %33 by %c16_i32_7 dim 1 : vector<8x256xf32>, i32 -> vector<8x256xf32>
    %c240_i32_8 = arith.constant 240 : i32
    %40 = tpu.dynamic_rotate %33 by %c240_i32_8 dim 1 : vector<8x256xf32>, i32 -> vector<8x256xf32>
    %41 = vector.shape_cast %6 : vector<1x256xi1> to vector<1x256xi1>
    %42 = vector.broadcast %41 : vector<1x256xi1> to vector<8x256xi1>
    %43 = arith.select %42, %39, %40 : vector<8x256xi1>, vector<8x256xf32>
    %44 = arith.subf %32, %38 : vector<8x256xf32>
    %45 = arith.subf %33, %43 : vector<8x256xf32>
    %46 = arith.addf %44, %45 : vector<8x256xf32>
    %cst_9 = arith.constant 5.000000e-01 : f32
    %47 = vector.broadcast %cst_9 : f32 to vector<8x256xf32>
    %48 = arith.mulf %46, %47 : vector<8x256xf32>
    %c0_10 = arith.constant 0 : index
    %c0_11 = arith.constant 0 : index
    %49 = vector.load %arg2[%c0_10, %c0_11] : memref<8x256xf32, #tpu.memory_space<vmem>>, vector<8x256xf32>
    tpu.vector_store %arg2[%c0_10, %c0_11], %48 {strides = array<i32>} : memref<8x256xf32, #tpu.memory_space<vmem>>, vector<8x256xf32>,
    return
  }
  func.func @transform_0(%arg0: i32) -> (i32, i32) {
    %c0_i32 = arith.constant 0 : i32
    %c0_i32_0 = arith.constant 0 : i32
    return %arg0, %c0_i32 : i32, i32
  }
  func.func @transform_1(%arg0: i32) -> (i32, i32) {
    %c0_i32 = arith.constant 0 : i32
    %c0_i32_0 = arith.constant 0 : i32
    return %arg0, %c0_i32 : i32, i32
  }
}

</mosaic_0001>

<bundles_post_ra>
// kernel: tpu_custom_call.1
= control target key start
LH: loop header
LB: loop body
LE: loop exit
PB: predicated region body
PF: predicated region fallthrough
CT: control target
= control target key end

     0   :  { %6 = vsyncpa [#allocation3], 0  ;;  %s292_s0 = inlined_call_operand.hbm [shape: f32[8,256], index: 0, kind: input, shape index: {}]   ;;  %s293_s1 = inlined_call_operand.hbm [shape: f32[8,256], index: 1, kind: output, shape index: {}]  }
   0x1   :  { %7 = vsyncpa [#allocation4], 0  ;;  %s212_s6 = smov [#allocation2]  }
   0x2   :  { %s14_s7 = sshll.u32 %s212_s6, 4  ;;  %s15_s7 = int_to_ptr.vmem [resolvable:$true] %s14_s7 }
   0x3   :  { %s176_s8 = scalar_lea.vmem %s15_s7, 256  ;;  %p181_p1 = scmp.lt.s32.totalorder %s15_s7, %s15_s7 }
   0x4   :  { %p177_p0 = scmp.ne.s32.totalorder %s15_s7, %s176_s8  ;;  %p182_p2 = scmp.lt.s32.totalorder %s176_s8, %s176_s8 }
   0x6   :  { %p183_p3 = por %p182_p2, %p181_p1 }
   0x8   :  { %p184_p4 = pnand %p183_p3, %p177_p0 }
   0xa   :  { %187 = shalt.err (!%p184_p4)
}
   0xb   :  { %17 = dma.hbm_to_vmem [thread:$0]  %s292_s0, 256, %s15_s7, [#allocation3]  }
   0xc   :  { %208 = dma.done.wait [#allocation3], 256  }
   0xd   :  { %209 = vsyncadd [#allocation3], 4294967040  ;;  %v34_v0 = vld [vmem:[#allocation2] sm:$0xff]  ;;  %s213_s11 = smov 16   ;;  %s214_s12 = smov 112   ;;  %v35_v1 = vld [vmem:[#allocation2 + $0x8] sm:$0xff]  ;;  %v21_v2 = vlaneseq }
   0xe   :  { %43 = vrot.lane.b32.xlu1 %v34_v0, %s213_s11  ;;  %36 = vrot.lane.b32.xlu0 %v34_v0, %s214_s12  ;;  %s215_s13 = smov 1   ;;  %s216_s0 = smov 127  }
   0xf   :  { %v239_v3 = vand.u32 127, %v21_v2  ;;  %s217_s14 = smov [#allocation5]  }
  0x10   :  { %s149_s15 = sshll.u32 %s217_s14, 4  ;;  %s150_s15 = int_to_ptr.vmem [resolvable:$true] %s149_s15 }
  0x11   :  { %vm26_vm0 = vcmp.lt.s32.totalorder %v239_v3, 16  ;;  %vm40_vm1 = vcmp.lt.s32.totalorder %v239_v3, 112  ;;  %v244_v6 = vadd.s32 128, %v239_v3  ;;  %v24_v11 = vand.u32 15, %v239_v3  ;;  %s188_s16 = scalar_lea.vmem %s150_s15, 256  ;;  %p193_p6 = scmp.lt.s32.totalorder %s150_s15, %s150_s15 }
  0x12   :  { %45 = vrot.lane.b32.xlu1 %v35_v1, %s213_s11  ;;  %38 = vrot.lane.b32.xlu0 %v35_v1, %s214_s12  ;;  %vm59_vm2 = vcmp.lt.s32.totalorder %v239_v3, 1  ;;  %vm66_vm3 = vcmp.lt.s32.totalorder %v239_v3, 127  ;;  %p189_p5 = scmp.ne.s32.totalorder %s150_s15, %s188_s16  ;;  %p194_p7 = scmp.lt.s32.totalorder %s188_s16, %s188_s16 }
  0x13   :  { %v25_v12 = vand.u32 15, %v244_v6  ;;  %vm32_vm4 = vcmp.eq.s32.totalorder %v24_v11, 15  ;;  %vm30_vm6 = vcmp.eq.s32.totalorder %v24_v11, 0  ;;  %vm29_vm8 = vcmp.ge.s32.totalorder %v244_v6, 240 }
  0x14   :  { %p195_p8 = por %p194_p7, %p193_p6 }
  0x15   :  { %vm33_vm5 = vcmp.eq.s32.totalorder %v25_v12, 15  ;;  %vm31_vm7 = vcmp.eq.s32.totalorder %v25_v12, 0 }
  0x16   :  { %57 = vrot.lane.b32.xlu1 %v35_v1, %s215_s13  ;;  %55 = vrot.lane.b32.xlu0 %v34_v0, %s215_s13  ;;  %p196_p9 = pnand %p195_p8, %p189_p5 }
  0x1a   :  { %64 = vrot.lane.b32.xlu1 %v35_v1, %s216_s0  ;;  %62 = vrot.lane.b32.xlu0 %v34_v0, %s216_s0 }
  0x80   :  { %v44_v4 = vpop.permute.xlu1 %43  ;;  %v37_v5 = vpop.permute.xlu0 %36 }
  0x84   :  { %v46_v7 = vpop.permute.xlu1 %45  ;;  %v39_v8 = vpop.permute.xlu0 %38 }
  0x85   :  { %v48_v9 = vsel %vm26_vm0, %v46_v7, %v44_v4  ;;  %v41_v10 = vsel %vm40_vm1, %v37_v5, %v39_v8  ;;  %v47_v15 = vsel %vm26_vm0, %v44_v4, %v46_v7 }
  0x86   :  { %v53_v16 = vsel %vm26_vm0, %v41_v10, %v48_v9  ;;  %v78_v17 = vsub.f32 %v47_v15, %v35_v1 }
  0x87   :  { %v77_v18 = vsub.f32 %v53_v16, %v34_v0 }
  0x88   :  { %v58_v13 = vpop.permute.xlu1 %57  ;;  %v56_v14 = vpop.permute.xlu0 %55  ;;  %v82_v29 = vmul.f32 %v78_v17, %v78_v17 }
  0x89   :  { %v60_v21 = vsel %vm59_vm2, %v56_v14, %v58_v13  ;;  %v61_v22 = vsel %vm59_vm2, %v58_v13, %v56_v14  ;;  %v81_v30 = vmul.f32 %v77_v18, %v77_v18 }
  0x8c   :  { %v65_v19 = vpop.permute.xlu1 %64  ;;  %v63_v20 = vpop.permute.xlu0 %62 }
  0x8d   :  { %v67_v23 = vsel %vm66_vm3, %v63_v20, %v65_v19  ;;  %v68_v24 = vsel %vm66_vm3, %v65_v19, %v63_v20 }
  0x8e   :  { %v73_v25 = vsel %vm32_vm4, %v61_v22, %v67_v23  ;;  %v74_v26 = vsel %vm33_vm5, %v60_v21, %v68_v24 }
  0x8f   :  { %v75_v27 = vsub.f32 %v73_v25, %v34_v0  ;;  %v76_v28 = vsub.f32 %v74_v26, %v35_v1 }
  0x91   :  { %v79_v31 = vmul.f32 %v75_v27, %v75_v27  ;;  %v80_v32 = vmul.f32 %v76_v28, %v76_v28 }
  0x93   :  { %v83_v33 = vadd.f32 %v81_v30, %v79_v31  ;;  %v84_v34 = vadd.f32 %v82_v29, %v80_v32 }
  0x95   :  { %v85_v35 = vmul.f32 0.0002, %v83_v33  ;;  %v86_v36 = vmul.f32 0.0002, %v84_v34 }
  0x97   :  { %v87_v37 = vsub.f32 0.0, %v85_v35  ;;  %v88_v38 = vsub.f32 0.0, %v86_v36 }
  0x99   :  { %v89_v39 = vmul.f32 1.442695, %v87_v37  ;;  %v91_v40 = vmul.f32 1.442695, %v88_v38 }
  0x9b   :  { %164 = vpow2.f32 %v89_v39 }
  0x9c   :  { %166 = vpow2.f32 %v91_v40 }
  0xa8   :  { %v165_v41 = vpop.eup %164 }
  0xa9   :  { %v167_v42 = vpop.eup %166  ;;  %v93_v43 = vmul.f32 %v165_v41, %v75_v27  ;;  %v95_v45 = vmul.f32 %v165_v41, %v77_v18 }
  0xaa   :  { %v94_v44 = vmul.f32 %v167_v42, %v76_v28  ;;  %v96_v46 = vmul.f32 %v167_v42, %v78_v17 }
  0xab   :  { %97 = vrot.lane.b32.xlu0 %v93_v43, %s216_s0 }
  0xac   :  { %99 = vrot.lane.b32.xlu1 %v94_v44, %s216_s0 }
  0xaf   :  { %103 = vrot.lane.b32.xlu0 %v93_v43, %s215_s13 }
  0xb0   :  { %105 = vrot.lane.b32.xlu1 %v94_v44, %s215_s13 }
  0xb3   :  { %115 = vrot.lane.b32.xlu0 %v95_v45, %s213_s11 }
  0xb4   :  { %117 = vrot.lane.b32.xlu1 %v96_v46, %s213_s11 }
  0xb7   :  { %121 = vrot.lane.b32.xlu0 %v95_v45, %s214_s12 }
  0xb8   :  { %123 = vrot.lane.b32.xlu1 %v96_v46, %s214_s12 }
 0x11d   :  { %v98_v47 = vpop.permute.xlu0 %97 }
 0x11e   :  { %v100_v48 = vpop.permute.xlu1 %99 }
 0x11f   :  { %v101_v55 = vsel %vm66_vm3, %v98_v47, %v100_v48  ;;  %v102_v56 = vsel %vm66_vm3, %v100_v48, %v98_v47 }
 0x121   :  { %v104_v49 = vpop.permute.xlu0 %103 }
 0x122   :  { %v106_v50 = vpop.permute.xlu1 %105 }
 0x123   :  { %v108_v52 = vsel %vm59_vm2, %v106_v50, %v104_v49  ;;  %v107_v54 = vsel %vm59_vm2, %v104_v49, %v106_v50 }
 0x124   :  { %v113_v57 = vsel %vm30_vm6, %v101_v55, %v108_v52  ;;  %v114_v59 = vsel %vm31_vm7, %v102_v56, %v107_v54 }
 0x125   :  { %v116_v51 = vpop.permute.xlu0 %115  ;;  %v133_v0 = vsub.f32 %v93_v43, %v113_v57  ;;  %v134_v4 = vsub.f32 %v94_v44, %v114_v59 }
 0x126   :  { %v118_v53 = vpop.permute.xlu1 %117 }
 0x127   :  { %v119_v61 = vsel %vm26_vm0, %v116_v51, %v118_v53 }
 0x129   :  { %v122_v58 = vpop.permute.xlu0 %121 }
 0x12a   :  { %v124_v60 = vpop.permute.xlu1 %123 }
 0x12b   :  { %v125_v62 = vsel %vm40_vm1, %v122_v58, %v124_v60  ;;  %v126_v63 = vsel %vm40_vm1, %v124_v60, %v122_v58 }
 0x12c   :  { %v132_v1 = vsel %vm29_vm8, %v119_v61, %v126_v63  ;;  %v135_v2 = vsub.f32 %v95_v45, %v125_v62 }
 0x12d   :  { %v136_v5 = vsub.f32 %v96_v46, %v132_v1 }
 0x12e   :  { %v137_v7 = vadd.f32 %v135_v2, %v133_v0 }
 0x12f   :  { %v138_v6 = vadd.f32 %v136_v5, %v134_v4 }
 0x130   :  { %v139_v8 = vmul.f32 0.5, %v137_v7 }
 0x131   :  { %v140_v9 = vmul.f32 0.5, %v138_v6 }
 0x132   :  { %141 = vst [vmem:[#allocation5] sm:$0xff] %v139_v8 }
 0x133   :  { %142 = vst [vmem:[#allocation5 + $0x8] sm:$0xff] %v140_v9 }
 0x134   :  { %199 = shalt.err (!%p196_p9)
}
 0x135   :  { %152 = dma.vmem_to_hbm [thread:$0]  %s150_s15, 256, %s293_s1, [#allocation4]  }
 0x136   :  { %210 = dma.done.wait [#allocation4], 256  }
 0x137   :  { %211 = vsyncadd [#allocation4], 4294967040 }
 0x138   :  { %156 = vsyncpa [#allocation3], 1 }
 0x139   :  { %157 = vsyncpa [#allocation4], 1 }

</bundles_post_ra>
